<compile_context>
chip_gen: v6e
topology: v6e:2x2x1
jax: 0.10.0
libtpu: 0.0.40
codegen_flags: <defaults>
</compile_context>

<pallas_src>
import jax
import jax.numpy as jnp
from jax.experimental import pallas as pl
from jax.experimental.pallas import tpu as pltpu


def _round_up(x, m):
    return ((x + m - 1) // m) * m


def classifier_kernel(h_ref, w1_ref, b1_ref, w2_ref, b2_ref, o_ref):
    """One row tile of Linear(D->Hp) + ReLU + Linear(Hp->1).

    h_ref : (tm, D)   input rows (native dtype, fed straight to the MXU)
    w1_ref: (D, Hp)   layer-1 weight, pre-transposed, hidden dim zero-padded
    b1_ref: (1, Hp)   layer-1 bias (zero-padded)
    w2_ref: (Hp, 1)   layer-2 weight column (zero-padded rows contribute 0)
    b2_ref: (1, 1)    layer-2 bias (SMEM scalar)
    o_ref : (tm, 1)   output rows
    """
    x = h_ref[...]                                                     # (tm, D)

    # Layer 1: MXU contraction with f32 accumulation; bias + ReLU on the VPU.
    z1 = jnp.dot(x, w1_ref[...], preferred_element_type=jnp.float32)  # (tm, Hp)
    a1 = jnp.maximum(z1 + b1_ref[...].astype(jnp.float32), 0.0)       # (tm, Hp)

    # Layer 2: (tm, Hp) x (Hp, 1) on the MXU — no transpose of a1 needed.
    z2 = jnp.dot(a1, w2_ref[...].astype(jnp.float32),
                 preferred_element_type=jnp.float32)                   # (tm, 1)
    o_ref[...] = (z2 + b2_ref[0, 0].astype(jnp.float32)).astype(o_ref.dtype)


def classifier_forward(h, w1, b1, w2, b2, *, tm=None):
    """Pallas-backed forward pass. h: (N, D) -> (N, 1)."""
    N, D = h.shape
    H = w1.shape[0]
    assert w1.shape == (H, D) and b1.shape == (H,)
    assert w2.shape == (1, H) and b2.shape == (1,)

    # Row-tile selection:
    #   - single tile for small N (no over-padding beyond the 8-row sublane),
    #   - otherwise a multiple of 128 (lane/sublane-aligned stores), targeting
    #     >=4 grid steps (>=2 per TC on v7x) with tiles in [256, 2048] rows so
    #     single-TC v5e/v6e still amortize per-step overhead.  2048-row tiles
    #     are ~1 MiB/buffer here, far under every generation's scoped-VMEM cap.
    if tm is None:
        if N <= 256:
            tm = _round_up(max(N, 8), 8)
        else:
            tm = max(256, min(2048, _round_up(pl.cdiv(N, 4), 128)))
    elif tm >= N:
        tm = _round_up(N, 8)
    else:
        tm = _round_up(tm, 128)
    num_tiles = pl.cdiv(N, tm)

    # One-time layout plumbing on tiny weight tensors (XLA side, outside kernel).
    Hp = _round_up(H, 128)
    w1_t = jnp.zeros((D, Hp), w1.dtype).at[:, :H].set(jnp.transpose(w1))   # (D, Hp)
    b1_p = jnp.zeros((1, Hp), b1.dtype).at[:, :H].set(b1.reshape(1, H))    # (1, Hp)
    w2_c = jnp.zeros((Hp, 1), w2.dtype).at[:H, :].set(jnp.transpose(w2))   # (Hp, 1)
    b2_2d = b2.reshape(1, 1)                                               # SMEM scalar

    itemsize = jnp.dtype(h.dtype).itemsize
    cost = pl.CostEstimate(
        flops=2 * N * D * Hp + 2 * N * Hp,
        transcendentals=0,
        bytes_accessed=N * D * itemsize + N * itemsize
        + (D * Hp + 2 * Hp + 1) * itemsize,
    )

    return pl.pallas_call(
        classifier_kernel,
        out_shape=jax.ShapeDtypeStruct((N, 1), h.dtype),
        grid_spec=pltpu.PrefetchScalarGridSpec(
            num_scalar_prefetch=0,
            grid=(num_tiles,),
            in_specs=[
                pl.BlockSpec((tm, D), lambda i: (i, 0)),   # h rows (streamed; ragged last tile OK)
                pl.BlockSpec((D, Hp), lambda i: (0, 0)),   # W1^T (constant block, stays resident)
                pl.BlockSpec((1, Hp), lambda i: (0, 0)),   # b1
                pl.BlockSpec((Hp, 1), lambda i: (0, 0)),   # W2 column
                pl.BlockSpec(memory_space=pltpu.MemorySpace.SMEM),  # b2 scalar
            ],
            out_specs=pl.BlockSpec((tm, 1), lambda i: (i, 0)),
        ),
        compiler_params=pltpu.CompilerParams(
            dimension_semantics=("parallel",),
        ),
        cost_estimate=cost,
    )(h, w1_t, b1_p, w2_c, b2_2d)


def init_linear_params(key, out_features, in_features, dtype=jnp.float32):
    """Deterministic PyTorch-style nn.Linear init: U(-1/sqrt(fan_in), 1/sqrt(fan_in))."""
    k_w, k_b = jax.random.split(key)
    bound = 1.0 / jnp.sqrt(jnp.asarray(in_features, dtype))
    w = jax.random.uniform(k_w, (out_features, in_features), dtype, -bound, bound)
    b = jax.random.uniform(k_b, (out_features,), dtype, -bound, bound)
    return w, b


if __name__ == "__main__":
    # Shapes consistent with Classifier.forward(h): h is (N, input_dim).
    # N is intentionally NOT a multiple of the row tile to exercise the
    # no-padding / ragged-last-block path.
    N, input_dim, hidden_dim = 1000, 32, 64

    key = jax.random.PRNGKey(0)
    k_h, k_l1, k_l2 = jax.random.split(key, 3)

    h = jax.random.normal(k_h, (N, input_dim), jnp.float32)
    w1, b1 = init_linear_params(k_l1, hidden_dim, input_dim)
    w2, b2 = init_linear_params(k_l2, 1, hidden_dim)

    out = classifier_forward(h, w1, b1, w2, b2)
    out = jax.block_until_ready(out)

    # Pure-JAX reference of the same forward pass.
    ref = jnp.maximum(h @ w1.T + b1, 0.0) @ w2.T + b2
    assert out.shape == (N, 1)
    assert jnp.allclose(out, ref, atol=1e-5, rtol=1e-5), "mismatch vs reference"

    print("KERNEL_OK")
</pallas_src>

<mosaic_0001>
module attributes {stable_mosaic.version = 11 : i64} {
  func.func @classifier_kernel(%arg0: i32, %arg1: memref<256x32xf32, #tpu.memory_space<vmem>>, %arg2: memref<32x128xf32, #tpu.memory_space<vmem>>, %arg3: memref<1x128xf32, #tpu.memory_space<vmem>>, %arg4: memref<128x1xf32, #tpu.memory_space<vmem>>, %arg5: memref<1x1xf32, #tpu.memory_space<smem>>, %arg6: memref<256x1xf32, #tpu.memory_space<vmem>>) attributes {dimension_semantics = [#tpu.dimension_semantics<parallel>], iteration_bounds = array<i64: 4>, scalar_prefetch = 0 : i64, scratch_operands = 0 : i64, tpu.core_type = #tpu.core_type<tc>, window_params = [{transform_indices = @transform_0, window_bounds = array<i64: 256, 32>}, {pipeline_mode = #tpu.pipeline_mode<synchronous>, transform_indices = @transform_1, window_bounds = array<i64: 32, 128>}, {pipeline_mode = #tpu.pipeline_mode<synchronous>, transform_indices = @transform_2, window_bounds = array<i64: 1, 128>}, {pipeline_mode = #tpu.pipeline_mode<synchronous>, transform_indices = @transform_3, window_bounds = array<i64: 128, 1>}, {transform_indices = @transform_4, window_bounds = array<i64: 1, 1>}, {transform_indices = @transform_5, window_bounds = array<i64: 256, 1>}]} {
    %c0 = arith.constant 0 : index
    %c0_0 = arith.constant 0 : index
    %0 = vector.load %arg1[%c0, %c0_0] : memref<256x32xf32, #tpu.memory_space<vmem>>, vector<256x32xf32>
    %c0_1 = arith.constant 0 : index
    %c0_2 = arith.constant 0 : index
    %1 = vector.load %arg2[%c0_1, %c0_2] : memref<32x128xf32, #tpu.memory_space<vmem>>, vector<32x128xf32>
    %cst = arith.constant dense<0.000000e+00> : vector<256x128xf32>
    %2 = tpu.matmul %0, %1, %cst {dimension_numbers = #tpu.dot_dimension_numbers<[1], [0], [0], [1], [0, 0, 1, 1], [], []>} : vector<256x32xf32>, vector<32x128xf32>, vector<256x128xf32> -> vector<256x128xf32>
    %c0_3 = arith.constant 0 : index
    %c0_4 = arith.constant 0 : index
    %3 = vector.load %arg3[%c0_3, %c0_4] : memref<1x128xf32, #tpu.memory_space<vmem>>, vector<1x128xf32>
    %4 = vector.broadcast %3 : vector<1x128xf32> to vector<256x128xf32>
    %5 = arith.addf %2, %4 : vector<256x128xf32>
    %cst_5 = arith.constant 0.000000e+00 : f32
    %6 = vector.broadcast %cst_5 : f32 to vector<256x128xf32>
    %7 = arith.maximumf %5, %6 : vector<256x128xf32>
    %c0_6 = arith.constant 0 : index
    %c0_7 = arith.constant 0 : index
    %8 = vector.load %arg4[%c0_6, %c0_7] : memref<128x1xf32, #tpu.memory_space<vmem>>, vector<128x1xf32>
    %cst_8 = arith.constant dense<0.000000e+00> : vector<256x1xf32>
    %9 = tpu.matmul %7, %8, %cst_8 {dimension_numbers = #tpu.dot_dimension_numbers<[1], [0], [0], [1], [0, 0, 1, 1], [], []>} : vector<256x128xf32>, vector<128x1xf32>, vector<256x1xf32> -> vector<256x1xf32>
    %c0_9 = arith.constant 0 : index
    %c0_10 = arith.constant 0 : index
    %10 = memref.load %arg5[%c0_9, %c0_10] : memref<1x1xf32, #tpu.memory_space<smem>>
    %11 = vector.broadcast %10 : f32 to vector<256x1xf32>
    %12 = arith.addf %9, %11 : vector<256x1xf32>
    %c0_11 = arith.constant 0 : index
    %c0_12 = arith.constant 0 : index
    %13 = vector.load %arg6[%c0_11, %c0_12] : memref<256x1xf32, #tpu.memory_space<vmem>>, vector<256x1xf32>
    tpu.vector_store %arg6[%c0_11, %c0_12], %12 {strides = array<i32>} : memref<256x1xf32, #tpu.memory_space<vmem>>, vector<256x1xf32>,
    return
  }
  func.func @transform_0(%arg0: i32) -> (i32, i32) {
    %c0_i32 = arith.constant 0 : i32
    %c0_i32_0 = arith.constant 0 : i32
    return %arg0, %c0_i32 : i32, i32
  }
  func.func @transform_1(%arg0: i32) -> (i32, i32) {
    %c0_i32 = arith.constant 0 : i32
    %c0_i32_0 = arith.constant 0 : i32
    %c0_i32_1 = arith.constant 0 : i32
    return %c0_i32, %c0_i32_0 : i32, i32
  }
  func.func @transform_2(%arg0: i32) -> (i32, i32) {
    %c0_i32 = arith.constant 0 : i32
    %c0_i32_0 = arith.constant 0 : i32
    %c0_i32_1 = arith.constant 0 : i32
    return %c0_i32, %c0_i32_0 : i32, i32
  }
  func.func @transform_3(%arg0: i32) -> (i32, i32) {
    %c0_i32 = arith.constant 0 : i32
    %c0_i32_0 = arith.constant 0 : i32
    %c0_i32_1 = arith.constant 0 : i32
    return %c0_i32, %c0_i32_0 : i32, i32
  }
  func.func @transform_4(%arg0: i32) -> (i32, i32) {
    %c0_i32 = arith.constant 0 : i32
    %c0_i32_0 = arith.constant 0 : i32
    %c0_i32_1 = arith.constant 0 : i32
    return %c0_i32, %c0_i32_0 : i32, i32
  }
  func.func @transform_5(%arg0: i32) -> (i32, i32) {
    %c0_i32 = arith.constant 0 : i32
    %c0_i32_0 = arith.constant 0 : i32
    return %arg0, %c0_i32 : i32, i32
  }
}

</mosaic_0001>

<bundles_post_ra>
// kernel: tpu_custom_call.1
= control target key start
LH: loop header
LB: loop body
LE: loop exit
PB: predicated region body
PF: predicated region fallthrough
CT: control target
= control target key end

     0   :  { %s2221_s0 = inlined_call_operand.vmem [shape: f32[1000,32], index: 0, kind: input, shape index: {}]   ;;  %s2222_s1 = inlined_call_operand.vmem [shape: f32[32,128], index: 1, kind: input, shape index: {}]   ;;  %s2223_s2 = inlined_call_operand.vmem [shape: f32[1,128], index: 2, kind: input, shape index: {}]   ;;  %s2224_s3 = inlined_call_operand.vmem [shape: f32[128,1], index: 3, kind: input, shape index: {}]   ;;  %s2225_s4 = inlined_call_operand.<no memory space> [shape: f32[1,1], index: 4, kind: input, shape index: {}]   ;;  %s2226_s5 = inlined_call_operand.vmem [shape: f32[1000,1], index: 5, kind: output, shape index: {}]  }
   0x1   :  { %10 = sst [smem:[#allocation2]] %s2225_s4 }
   0x2   :  { %s1781_s20 = smov 0   ;;  %s1783_s21 = smov 0  }
   0x3   :  { %s1785_s22 = smov 0  }
   0x4 LB: > { %s1794_s4 = sadd.s32 4294967295, %s1714_s22   ;;  %s1796_s23 = sadd.s32 1, %s1714_s22   ;;  %s1714_s22 = sphi %s1785_s22, %s2235_s22   ;;  %s1710_s21 = sphi %s1783_s21, %s2234_s21   ;;  %s1706_s20 = sphi %s1781_s20, %s2233_s20  }
   0x5   : > { %s130_s24 = ssub.s32 %s1714_s22, %s1796_s23  ;;  %s133_s25 = sadd.s32 1, %s1710_s21 }
   0x6   : > { %p131_p0 = scmp.eq.s32.totalorder %s130_s24, 0  ;;  %p143_p1 = scmp.ne.s32.totalorder %s1710_s21, %s1706_s20 }
   0x7   : > { %p144_p2 = scmp.eq.s32.totalorder %s1794_s4, 3  ;;  %p1263_p3 = scmp.ge.s32.totalorder %s1714_s22, 1 }
   0x8   : > { %s1804_s26 = scalar_select %p131_p0, %s1710_s21, %s133_s25  }
   0x9   : > { %p1806_p4 = por %p144_p2, %p143_p1  ;;  %p197_p5 = scmp.lt.s32.totalorder %s1714_s22, 5 }
   0xb   : > { %p198_p6 = pnand %p1263_p3, %p197_p5 }
   0xc   : > { %s1817_s7 = sshll.u32 (!%p198_p6), %s1794_s4, 5  ;;  %s660_s13 = sld [smem:[#allocation2]] (!%p198_p6) }
   0xd   : > { %201 = sbr.rel (%p198_p6) target bundleno = 533 (0x215), region = 40  ;;  %p233_p7 = scmp.lt.s32.totalorder (!%p198_p6), %s1817_s7, 124 }
   0xe   : > { %s225_s14 = sand.u32 (!%p198_p6), 1, %s1706_s20  }
   0xf   : > { %s1264_s15 = sshll.u32 (!%p198_p6), %s225_s14, 8 }
  0x10   : > { %s1985_s16 = scalar_lea.vmem (!%p198_p6), [#allocation3], %s1264_s15  }
  0x12   : > { %v282_v0 = vld [vmem:[%s2222_s1 + $0x18] sm:$0xff]  ;;  %v281_v1 = vld [vmem:[%s2222_s1 + $0x10] sm:$0xff]  ;;  %v280_v3 = vld [vmem:[%s2222_s1 + $0x8] sm:$0xff]  ;;  %s234_s12 = scalar_select %p233_p7, %s1817_s7, 124  ;;  %vm290_vm0 = vcmask 261120   ;;  %vm887_vm1 = vcmask 7168  }
  0x13   : > { %1404 = vmatprep.subr.mxu0 %v282_v0  ;;  %v659_v2 = vld [vmem:[%s2224_s3 + $0x78] sm:$0xff]  ;;  %v658_v4 = vld [vmem:[%s2224_s3 + $0x70] sm:$0xff]  ;;  %v279_v5 = vld [vmem:[%s2222_s1] sm:$0xff]  ;;  %s928_s20 = ssub.s32 (%p1806_p4), 125, %s1817_s7 }
  0x14   : > { %1405 = vmatpush3.msra.mxu0 %v282_v0  ;;  %1540 = vmatprep.subr.mxu1 %v659_v2  ;;  %s1266_s17 = sshll.u32 %s234_s12, 3  ;;  %v657_v6 = vld [vmem:[%s2224_s3 + $0x68] sm:$0xff]  ;;  %v656_v11 = vld [vmem:[%s2224_s3 + $0x60] sm:$0xff]  ;;  %v655_v14 = vld [vmem:[%s2224_s3 + $0x58] sm:$0xff]  ;;  %p929_p8 = scmp.lt.s32.totalorder (%p1806_p4), %s928_s20, 32 }
  0x15   : > { %1406 = vmatprep.subr.mxu0 %v281_v1  ;;  %1556 = vmatpush3.msra.mxu1 %v659_v2  ;;  %s1839_s25 = scalar_lea.vmem %s2221_s0, %s1266_s17  ;;  %v654_v16 = vld [vmem:[%s2224_s3 + $0x50] sm:$0xff]  ;;  %v653_v18 = vld [vmem:[%s2224_s3 + $0x48] sm:$0xff]  ;;  %v652_v20 = vld [vmem:[%s2224_s3 + $0x40] sm:$0xff]  ;;  %s1317_s17 = sshll.u32 (%p1806_p4), %s1794_s4, 8 }
  0x16   : > { %1407 = vmatpush3.msra.mxu0 %v281_v1  ;;  %1541 = vmatprep.subr.mxu1 %v658_v4  ;;  %v247_v7 = vld [vmem:[%s1839_s25] sm:$0xff]  ;;  %v248_v8 = vld [vmem:[%s1839_s25 + $0x8] sm:$0xff]  ;;  %v249_v9 = vld [vmem:[%s1839_s25 + $0x10] sm:$0xff]  ;;  %s2089_s22 = scalar_lea.vmem (%p1806_p4), %s2226_s5, %s1317_s17  }
  0x17   : > { %1408 = vmatprep.subr.mxu0 %v280_v3  ;;  %1557 = vmatpush3.msra.mxu1 %v658_v4  ;;  %v250_v10 = vld [vmem:[%s1839_s25 + $0x18] sm:$0xff]  ;;  %v251_v12 = vld [vmem:[%s1839_s25 + $0x20] sm:$0xff]  ;;  %v252_v13 = vld [vmem:[%s1839_s25 + $0x28] sm:$0xff] }
  0x18   : > { %1409 = vmatpush3.msra.mxu0 %v280_v3  ;;  %1542 = vmatprep.subr.mxu1 %v657_v6  ;;  %v253_v15 = vld [vmem:[%s1839_s25 + $0x30] sm:$0xff]  ;;  %v254_v17 = vld [vmem:[%s1839_s25 + $0x38] sm:$0xff]  ;;  %v255_v19 = vld [vmem:[%s1839_s25 + $0x40] sm:$0xff] }
  0x19   : > { %1410 = vmatprep.subr.mxu0 %v279_v5  ;;  %1558 = vmatpush3.msra.mxu1 %v657_v6  ;;  %v256_v21 = vld [vmem:[%s1839_s25 + $0x48] sm:$0xff]  ;;  %v651_v22 = vld [vmem:[%s2224_s3 + $0x38] sm:$0xff]  ;;  %v257_v23 = vld [vmem:[%s1839_s25 + $0x50] sm:$0xff] }
  0x1a   : > { %1411 = vmatpush3.msra.mxu0 %v279_v5  ;;  %1412 = vmatprep.mubr.msk.f32.mxu0 %vm290_vm0, %v247_v7  ;;  %v650_v24 = vld [vmem:[%s2224_s3 + $0x30] sm:$0xff]  ;;  %v258_v25 = vld [vmem:[%s1839_s25 + $0x58] sm:$0xff]  ;;  %v649_v26 = vld [vmem:[%s2224_s3 + $0x28] sm:$0xff] }
  0x1b   : > { %1413 = vmatmul.mubr.msk.f32.vlgmr.msra.gmra.mxu0 %vm290_vm0, %v248_v8  ;;  %1460 = vmatprep.subr.mxu0 %v659_v2  ;;  %v259_v27 = vld [vmem:[%s1839_s25 + $0x60] sm:$0xff]  ;;  %v260_v29 = vld [vmem:[%s1839_s25 + $0x68] sm:$0xff]  ;;  %v261_v30 = vld [vmem:[%s1839_s25 + $0x70] sm:$0xff] }
  0x1c   : > { %1415 = vmatprep.mubr.msk.f32.mxu0 %vm290_vm0, %v249_v9  ;;  %1461 = vmatpush3.msra.mxu0 %v659_v2  ;;  %v648_v28 = vld [vmem:[%s2224_s3 + $0x20] sm:$0xff]  ;;  %v262_v31 = vld [vmem:[%s1839_s25 + $0x78] sm:$0xff]  ;;  %v264_v33 = vld [vmem:[%s1839_s25 + $0x88] sm:$0xff] }
  0x1d   : > { %1462 = vmatprep.subr.mxu0 %v658_v4  ;;  %1543 = vmatprep.subr.mxu1 %v656_v11  ;;  %v263_v32 = vld [vmem:[%s1839_s25 + $0x80] sm:$0xff]  ;;  %v265_v34 = vld [vmem:[%s1839_s25 + $0x90] sm:$0xff]  ;;  %v266_v35 = vld [vmem:[%s1839_s25 + $0x98] sm:$0xff] }
  0x1e   : > { %1463 = vmatpush3.msra.mxu0 %v658_v4  ;;  %1559 = vmatpush3.msra.mxu1 %v656_v11  ;;  %v267_v36 = vld [vmem:[%s1839_s25 + $0xa0] sm:$0xff]  ;;  %v268_v37 = vld [vmem:[%s1839_s25 + $0xa8] sm:$0xff]  ;;  %v269_v38 = vld [vmem:[%s1839_s25 + $0xb0] sm:$0xff] }
  0x1f   : > { %1416 = vmatmul.mubr.msk.f32.gmra.mxu0 %vm290_vm0, %v250_v10  ;;  %1464 = vmatprep.subr.mxu0 %v657_v6  ;;  %v270_v39 = vld [vmem:[%s1839_s25 + $0xb8] sm:$0xff]  ;;  %v271_v40 = vld [vmem:[%s1839_s25 + $0xc0] sm:$0xff]  ;;  %v272_v41 = vld [vmem:[%s1839_s25 + $0xc8] sm:$0xff] }
  0x20   : > { %1418 = vmatprep.mubr.msk.f32.mxu0 %vm290_vm0, %v251_v12  ;;  %1465 = vmatpush3.msra.mxu0 %v657_v6  ;;  %v273_v42 = vld [vmem:[%s1839_s25 + $0xd0] sm:$0xff]  ;;  %v274_v43 = vld [vmem:[%s1839_s25 + $0xd8] sm:$0xff]  ;;  %v275_v44 = vld [vmem:[%s1839_s25 + $0xe0] sm:$0xff] }
  0x21   : > { %1466 = vmatprep.subr.mxu0 %v656_v11  ;;  %1544 = vmatprep.subr.mxu1 %v655_v14  ;;  %v276_v45 = vld [vmem:[%s1839_s25 + $0xe8] sm:$0xff]  ;;  %v277_v46 = vld [vmem:[%s1839_s25 + $0xf0] sm:$0xff]  ;;  %v278_v47 = vld [vmem:[%s1839_s25 + $0xf8] sm:$0xff] }
  0x22   : > { %1467 = vmatpush3.msra.mxu0 %v656_v11  ;;  %1560 = vmatpush3.msra.mxu1 %v655_v14  ;;  %v647_v48 = vld [vmem:[%s2224_s3 + $0x18] sm:$0xff]  ;;  %v646_v49 = vld [vmem:[%s2224_s3 + $0x10] sm:$0xff]  ;;  %v645_v50 = vld [vmem:[%s2224_s3 + $0x8] sm:$0xff] }
  0x23   : > { %1419 = vmatmul.mubr.msk.f32.gmra.mxu0 %vm290_vm0, %v252_v13  ;;  %1468 = vmatprep.subr.mxu0 %v655_v14  ;;  %v644_v51 = vld [vmem:[%s2224_s3] sm:$0xff] }
  0x24   : > { %1421 = vmatprep.mubr.msk.f32.mxu0 %vm290_vm0, %v253_v15  ;;  %1469 = vmatpush3.msra.mxu0 %v655_v14  ;;  %v1947_v52 = vld [vmem:[%s2223_s2] ss:$0 sm:$0xff] }
  0x25   : > { %1470 = vmatprep.subr.mxu0 %v654_v16  ;;  %1545 = vmatprep.subr.mxu1 %v654_v16 }
  0x26   : > { %1471 = vmatpush3.msra.mxu0 %v654_v16  ;;  %1561 = vmatpush3.msra.mxu1 %v654_v16 }
  0x27   : > { %1422 = vmatmul.mubr.msk.f32.gmra.mxu0 %vm290_vm0, %v254_v17  ;;  %1472 = vmatprep.subr.mxu0 %v653_v18 }
  0x28   : > { %1424 = vmatprep.mubr.msk.f32.mxu0 %vm290_vm0, %v255_v19  ;;  %1473 = vmatpush3.msra.mxu0 %v653_v18 }
  0x29   : > { %1474 = vmatprep.subr.mxu0 %v652_v20  ;;  %1546 = vmatprep.subr.mxu1 %v653_v18 }
  0x2a   : > { %1475 = vmatpush3.msra.mxu0 %v652_v20  ;;  %1562 = vmatpush3.msra.mxu1 %v653_v18 }
  0x2b   : > { %1425 = vmatmul.mubr.msk.f32.gmra.mxu0 %vm290_vm0, %v256_v21  ;;  %1476 = vmatprep.subr.mxu0 %v651_v22 }
  0x2c   : > { %1427 = vmatprep.mubr.msk.f32.mxu0 %vm290_vm0, %v257_v23  ;;  %1477 = vmatpush3.msra.mxu0 %v651_v22 }
  0x2d   : > { %1478 = vmatprep.subr.mxu0 %v650_v24  ;;  %1547 = vmatprep.subr.mxu1 %v652_v20 }
  0x2e   : > { %1479 = vmatpush3.msra.mxu0 %v650_v24  ;;  %1563 = vmatpush3.msra.mxu1 %v652_v20 }
  0x2f   : > { %1428 = vmatmul.mubr.msk.f32.gmra.mxu0 %vm290_vm0, %v258_v25  ;;  %1480 = vmatprep.subr.mxu0 %v649_v26 }
  0x30   : > { %1430 = vmatprep.mubr.msk.f32.mxu0 %vm290_vm0, %v259_v27  ;;  %1481 = vmatpush3.msra.mxu0 %v649_v26 }
  0x31   : > { %1482 = vmatprep.subr.mxu0 %v648_v28  ;;  %1548 = vmatprep.subr.mxu1 %v651_v22 }
  0x32   : > { %1483 = vmatpush3.msra.mxu0 %v648_v28  ;;  %1564 = vmatpush3.msra.mxu1 %v651_v22 }
  0x33   : > { %1431 = vmatmul.mubr.msk.f32.gmra.mxu0 %vm290_vm0, %v260_v29  ;;  %1549 = vmatprep.subr.mxu1 %v650_v24 }
  0x34   : > { %1433 = vmatprep.mubr.msk.f32.mxu0 %vm290_vm0, %v261_v30  ;;  %1565 = vmatpush3.msra.mxu1 %v650_v24 }
  0x35   : > { %1550 = vmatprep.subr.mxu1 %v649_v26  ;;  %1484 = vmatprep.subr.mxu0 %v647_v48 }
  0x36   : > { %1566 = vmatpush3.msra.mxu1 %v649_v26  ;;  %1485 = vmatpush3.msra.mxu0 %v647_v48 }
  0x37   : > { %1434 = vmatmul.mubr.msk.f32.gmra.mxu0 %vm290_vm0, %v262_v31  ;;  %1551 = vmatprep.subr.mxu1 %v648_v28 }
  0x38   : > { %1436 = vmatprep.mubr.msk.f32.mxu0 %vm290_vm0, %v263_v32  ;;  %1567 = vmatpush3.msra.mxu1 %v648_v28 }
  0x39   : > { %1552 = vmatprep.subr.mxu1 %v647_v48  ;;  %1486 = vmatprep.subr.mxu0 %v646_v49 }
  0x3a   : > { %1568 = vmatpush3.msra.mxu1 %v647_v48  ;;  %1487 = vmatpush3.msra.mxu0 %v646_v49 }
  0x3b   : > { %1437 = vmatmul.mubr.msk.f32.gmra.mxu0 %vm290_vm0, %v264_v33  ;;  %1553 = vmatprep.subr.mxu1 %v646_v49 }
  0x3c   : > { %1439 = vmatprep.mubr.msk.f32.mxu0 %vm290_vm0, %v265_v34  ;;  %1569 = vmatpush3.msra.mxu1 %v646_v49 }
  0x3d   : > { %1488 = vmatprep.subr.mxu0 %v645_v50  ;;  %1554 = vmatprep.subr.mxu1 %v645_v50 }
  0x3e   : > { %1489 = vmatpush3.msra.mxu0 %v645_v50  ;;  %1570 = vmatpush3.msra.mxu1 %v645_v50 }
  0x3f   : > { %1440 = vmatmul.mubr.msk.f32.gmra.mxu0 %vm290_vm0, %v266_v35  ;;  %1490 = vmatprep.subr.mxu0 %v644_v51 }
  0x40   : > { %1442 = vmatprep.mubr.msk.f32.mxu0 %vm290_vm0, %v267_v36  ;;  %1555 = vmatprep.subr.mxu1 %v644_v51 }
  0x41   : > { %1491 = vmatpush3.msra.mxu0 %v644_v51  ;;  %1571 = vmatpush3.msra.mxu1 %v644_v51 }
  0x43   : > { %1443 = vmatmul.mubr.msk.f32.gmra.mxu0 %vm290_vm0, %v268_v37 }
  0x44   : > { %1445 = vmatprep.mubr.msk.f32.mxu0 %vm290_vm0, %v269_v38 }
  0x47   : > { %1446 = vmatmul.mubr.msk.f32.gmra.mxu0 %vm290_vm0, %v270_v39 }
  0x48   : > { %1448 = vmatprep.mubr.msk.f32.mxu0 %vm290_vm0, %v271_v40 }
  0x4b   : > { %1449 = vmatmul.mubr.msk.f32.gmra.mxu0 %vm290_vm0, %v272_v41 }
  0x4c   : > { %1451 = vmatprep.mubr.msk.f32.mxu0 %vm290_vm0, %v273_v42 }
  0x4f   : > { %1452 = vmatmul.mubr.msk.f32.gmra.mxu0 %vm290_vm0, %v274_v43 }
  0x50   : > { %1454 = vmatprep.mubr.msk.f32.mxu0 %vm290_vm0, %v275_v44 }
  0x53   : > { %1455 = vmatmul.mubr.msk.f32.gmra.mxu0 %vm290_vm0, %v276_v45 }
  0x54   : > { %1457 = vmatprep.mubr.msk.f32.mxu0 %vm290_vm0, %v277_v46 }
  0x57   : > { %1458 = vmatmul.mubr.msk.f32.gmra.mxu0 %vm290_vm0, %v278_v47 }
  0xdb   : > { %v1414_v53 = vpop.f32.mrf.mxu0 }
  0xdc   : > { %v459_v54 = vadd.f32 %v1414_v53, %v1947_v52 }
  0xdd   : > { %v453_v55 = vpop.f32.mrf.mxu0 }
  0xde   : > { %v454_v56 = vadd.f32 %v1947_v52, %v453_v55  ;;  %v613_v59 = vmax.f32 %v459_v54, 0.0 }
  0xdf   : > { %v1417_v57 = vpop.f32.mrf.mxu0 }
  0xe0   : > { %v612_v58 = vmax.f32 %v454_v56, 0.0  ;;  %v469_v60 = vadd.f32 %v1417_v57, %v1947_v52 }
  0xe1   : > { %v463_v61 = vpop.f32.mrf.mxu0 }
  0xe2   : > { %v464_v62 = vadd.f32 %v1947_v52, %v463_v61  ;;  %1492 = vmatprep.mubr.f32.mxu0 %v612_v58  ;;  %v615_v1 = vmax.f32 %v469_v60, 0.0 }
  0xe3   : > { %v1420_v63 = vpop.f32.mrf.mxu0  ;;  %1493 = vmatmul.mubr.f32.vlgmr.msra.gmra.mxu0 %v613_v59 }
  0xe4   : > { %v614_v0 = vmax.f32 %v464_v62, 0.0  ;;  %v479_v2 = vadd.f32 %v1420_v63, %v1947_v52 }
  0xe5   : > { %v473_v3 = vpop.f32.mrf.mxu0 }
  0xe6   : > { %v474_v4 = vadd.f32 %v1947_v52, %v473_v3  ;;  %1495 = vmatprep.mubr.f32.mxu0 %v614_v0  ;;  %v617_v7 = vmax.f32 %v479_v2, 0.0 }
  0xe7   : > { %v1423_v5 = vpop.f32.mrf.mxu0  ;;  %1496 = vmatmul.mubr.f32.gmra.mxu0 %v615_v1 }
  0xe8   : > { %v616_v6 = vmax.f32 %v474_v4, 0.0  ;;  %v489_v8 = vadd.f32 %v1423_v5, %v1947_v52 }
  0xe9   : > { %v483_v9 = vpop.f32.mrf.mxu0 }
  0xea   : > { %1498 = vmatprep.mubr.f32.mxu0 %v616_v6  ;;  %v484_v10 = vadd.f32 %v1947_v52, %v483_v9  ;;  %v619_v13 = vmax.f32 %v489_v8, 0.0 }
  0xeb   : > { %v1426_v11 = vpop.f32.mrf.mxu0  ;;  %1499 = vmatmul.mubr.f32.gmra.mxu0 %v617_v7 }
  0xec   : > { %v618_v12 = vmax.f32 %v484_v10, 0.0  ;;  %v499_v14 = vadd.f32 %v1426_v11, %v1947_v52 }
  0xed   : > { %v493_v15 = vpop.f32.mrf.mxu0 }
  0xee   : > { %v494_v16 = vadd.f32 %v1947_v52, %v493_v15  ;;  %1501 = vmatprep.mubr.f32.mxu1 %v618_v12  ;;  %v621_v19 = vmax.f32 %v499_v14, 0.0 }
  0xef   : > { %v1429_v17 = vpop.f32.mrf.mxu0  ;;  %1502 = vmatmul.mubr.f32.vlgmr.msra.gmra.mxu1 %v619_v13 }
  0xf0   : > { %v620_v18 = vmax.f32 %v494_v16, 0.0  ;;  %v509_v20 = vadd.f32 %v1429_v17, %v1947_v52 }
  0xf1   : > { %v503_v21 = vpop.f32.mrf.mxu0 }
  0xf2   : > { %v504_v22 = vadd.f32 %v1947_v52, %v503_v21  ;;  %1504 = vmatprep.mubr.f32.mxu1 %v620_v18  ;;  %v623_v25 = vmax.f32 %v509_v20, 0.0 }
  0xf3   : > { %v1432_v23 = vpop.f32.mrf.mxu0  ;;  %1505 = vmatmul.mubr.f32.gmra.mxu1 %v621_v19 }
  0xf4   : > { %v622_v24 = vmax.f32 %v504_v22, 0.0  ;;  %v519_v26 = vadd.f32 %v1432_v23, %v1947_v52  ;;  %v1982_v22 = vstv %s660_s13 }
  0xf5   : > { %v513_v27 = vpop.f32.mrf.mxu0 }
  0xf6   : > { %v514_v28 = vadd.f32 %v1947_v52, %v513_v27  ;;  %1507 = vmatprep.mubr.f32.mxu1 %v622_v24  ;;  %v625_v31 = vmax.f32 %v519_v26, 0.0 }
  0xf7   : > { %v1435_v29 = vpop.f32.mrf.mxu0  ;;  %1508 = vmatmul.mubr.f32.gmra.mxu1 %v623_v25 }
  0xf8   : > { %v624_v30 = vmax.f32 %v514_v28, 0.0  ;;  %v529_v32 = vadd.f32 %v1435_v29, %v1947_v52 }
  0xf9   : > { %v523_v33 = vpop.f32.mrf.mxu0 }
  0xfa   : > { %v524_v34 = vadd.f32 %v1947_v52, %v523_v33  ;;  %1510 = vmatprep.mubr.f32.mxu1 %v624_v30  ;;  %v627_v37 = vmax.f32 %v529_v32, 0.0 }
  0xfb   : > { %v1438_v35 = vpop.f32.mrf.mxu0  ;;  %1511 = vmatmul.mubr.f32.gmra.mxu1 %v625_v31 }
  0xfc   : > { %v626_v36 = vmax.f32 %v524_v34, 0.0  ;;  %v539_v38 = vadd.f32 %v1438_v35, %v1947_v52 }
  0xfd   : > { %v533_v39 = vpop.f32.mrf.mxu0 }
  0xfe   : > { %v534_v40 = vadd.f32 %v1947_v52, %v533_v39  ;;  %1513 = vmatprep.mubr.f32.mxu1 %v626_v36  ;;  %v629_v43 = vmax.f32 %v539_v38, 0.0 }
  0xff   : > { %v1441_v41 = vpop.f32.mrf.mxu0  ;;  %1514 = vmatmul.mubr.f32.gmra.mxu1 %v627_v37 }
 0x100   : > { %v628_v42 = vmax.f32 %v534_v40, 0.0  ;;  %v549_v44 = vadd.f32 %v1441_v41, %v1947_v52 }
 0x101   : > { %v543_v45 = vpop.f32.mrf.mxu0 }
 0x102   : > { %v544_v46 = vadd.f32 %v1947_v52, %v543_v45  ;;  %1516 = vmatprep.mubr.f32.mxu1 %v628_v42  ;;  %v631_v49 = vmax.f32 %v549_v44, 0.0 }
 0x103   : > { %v1444_v47 = vpop.f32.mrf.mxu0  ;;  %1517 = vmatmul.mubr.f32.gmra.mxu1 %v629_v43 }
 0x104   : > { %v630_v48 = vmax.f32 %v544_v46, 0.0  ;;  %v559_v50 = vadd.f32 %v1444_v47, %v1947_v52 }
 0x105   : > { %v553_v51 = vpop.f32.mrf.mxu0 }
 0x106   : > { %v554_v53 = vadd.f32 %v1947_v52, %v553_v51  ;;  %1519 = vmatprep.mubr.f32.mxu1 %v630_v48  ;;  %v633_v56 = vmax.f32 %v559_v50, 0.0 }
 0x107   : > { %v1447_v54 = vpop.f32.mrf.mxu0  ;;  %1520 = vmatmul.mubr.f32.gmra.mxu1 %v631_v49 }
 0x108   : > { %v632_v55 = vmax.f32 %v554_v53, 0.0  ;;  %v569_v57 = vadd.f32 %v1447_v54, %v1947_v52 }
 0x109   : > { %v563_v58 = vpop.f32.mrf.mxu0 }
 0x10a   : > { %v564_v59 = vadd.f32 %v1947_v52, %v563_v58  ;;  %1522 = vmatprep.mubr.f32.mxu1 %v632_v55  ;;  %v635_v62 = vmax.f32 %v569_v57, 0.0 }
 0x10b   : > { %v1450_v60 = vpop.f32.mrf.mxu0  ;;  %1523 = vmatmul.mubr.f32.gmra.mxu1 %v633_v56 }
 0x10c   : > { %v634_v61 = vmax.f32 %v564_v59, 0.0  ;;  %v579_v63 = vadd.f32 %v1450_v60, %v1947_v52 }
 0x10d   : > { %v573_v0 = vpop.f32.mrf.mxu0 }
 0x10e   : > { %v574_v1 = vadd.f32 %v1947_v52, %v573_v0  ;;  %1525 = vmatprep.mubr.f32.mxu1 %v634_v61  ;;  %v637_v4 = vmax.f32 %v579_v63, 0.0 }
 0x10f   : > { %v1453_v2 = vpop.f32.mrf.mxu0  ;;  %1526 = vmatmul.mubr.f32.gmra.mxu1 %v635_v62 }
 0x110   : > { %v636_v3 = vmax.f32 %v574_v1, 0.0  ;;  %v589_v5 = vadd.f32 %v1453_v2, %v1947_v52 }
 0x111   : > { %v583_v6 = vpop.f32.mrf.mxu0 }
 0x112   : > { %v584_v7 = vadd.f32 %v1947_v52, %v583_v6  ;;  %1528 = vmatprep.mubr.f32.mxu1 %v636_v3  ;;  %v639_v10 = vmax.f32 %v589_v5, 0.0 }
 0x113   : > { %v1456_v8 = vpop.f32.mrf.mxu0  ;;  %1529 = vmatmul.mubr.f32.gmra.mxu1 %v637_v4 }
 0x114   : > { %v638_v9 = vmax.f32 %v584_v7, 0.0  ;;  %v599_v11 = vadd.f32 %v1456_v8, %v1947_v52 }
 0x115   : > { %v593_v12 = vpop.f32.mrf.mxu0 }
 0x116   : > { %v594_v13 = vadd.f32 %v1947_v52, %v593_v12  ;;  %1531 = vmatprep.mubr.f32.mxu1 %v638_v9  ;;  %v641_v16 = vmax.f32 %v599_v11, 0.0 }
 0x117   : > { %v1459_v14 = vpop.f32.mrf.mxu0  ;;  %1532 = vmatmul.mubr.f32.gmra.mxu1 %v639_v10 }
 0x118   : > { %v640_v15 = vmax.f32 %v594_v13, 0.0  ;;  %v609_v17 = vadd.f32 %v1459_v14, %v1947_v52 }
 0x119   : > { %v603_v18 = vpop.f32.mrf.mxu0 }
 0x11a   : > { %v604_v19 = vadd.f32 %v1947_v52, %v603_v18  ;;  %1534 = vmatprep.mubr.f32.mxu1 %v640_v15  ;;  %v643_v21 = vmax.f32 %v609_v17, 0.0 }
 0x11b   : > { %1535 = vmatmul.mubr.f32.gmra.mxu1 %v641_v16 }
 0x11c   : > { %v642_v20 = vmax.f32 %v604_v19, 0.0 }
 0x11e   : > { %1537 = vmatprep.mubr.f32.mxu1 %v642_v20 }
 0x11f   : > { %1538 = vmatmul.mubr.f32.gmra.mxu1 %v643_v21 }
 0x1a3   : > { %v1494_v23 = vpop.f32.mrf.mxu0 }
 0x1a4   : > { %v734_v24 = vadd.f32 %v1494_v23, %v1982_v22 }
 0x1a5   : > { %v728_v25 = vpop.f32.mrf.mxu0 }
 0x1a6   : > { %889 = vst.msk [vmem:[%s1985_s16 + $0x8] sm:$0xff] %vm887_vm1, %v734_v24  ;;  %v729_v52 = vadd.f32 %v728_v25, %v1982_v22 }
 0x1a7   : > { %v1497_v26 = vpop.f32.mrf.mxu0 }
 0x1a8   : > { %888 = vst.msk [vmem:[%s1985_s16] sm:$0xff] %vm887_vm1, %v729_v52  ;;  %v744_v27 = vadd.f32 %v1497_v26, %v1982_v22 }
 0x1a9   : > { %v738_v28 = vpop.f32.mrf.mxu0 }
 0x1aa   : > { %891 = vst.msk [vmem:[%s1985_s16 + $0x18] sm:$0xff] %vm887_vm1, %v744_v27  ;;  %v739_v29 = vadd.f32 %v738_v28, %v1982_v22 }
 0x1ab   : > { %v1500_v30 = vpop.f32.mrf.mxu0 }
 0x1ac   : > { %890 = vst.msk [vmem:[%s1985_s16 + $0x10] sm:$0xff] %vm887_vm1, %v739_v29  ;;  %v754_v31 = vadd.f32 %v1500_v30, %v1982_v22 }
 0x1ad   : > { %v748_v32 = vpop.f32.mrf.mxu0 }
 0x1ae   : > { %893 = vst.msk [vmem:[%s1985_s16 + $0x28] sm:$0xff] %vm887_vm1, %v754_v31  ;;  %v749_v33 = vadd.f32 %v748_v32, %v1982_v22 }
 0x1af   : > { %v1503_v34 = vpop.f32.mrf.mxu1 }
 0x1b0   : > { %892 = vst.msk [vmem:[%s1985_s16 + $0x20] sm:$0xff] %vm887_vm1, %v749_v33  ;;  %v764_v35 = vadd.f32 %v1503_v34, %v1982_v22 }
 0x1b1   : > { %v758_v36 = vpop.f32.mrf.mxu1 }
 0x1b2   : > { %895 = vst.msk [vmem:[%s1985_s16 + $0x38] sm:$0xff] %vm887_vm1, %v764_v35  ;;  %v759_v37 = vadd.f32 %v758_v36, %v1982_v22 }
 0x1b3   : > { %v1506_v38 = vpop.f32.mrf.mxu1 }
 0x1b4   : > { %894 = vst.msk [vmem:[%s1985_s16 + $0x30] sm:$0xff] %vm887_vm1, %v759_v37  ;;  %v774_v39 = vadd.f32 %v1506_v38, %v1982_v22 }
 0x1b5   : > { %v768_v40 = vpop.f32.mrf.mxu1 }
 0x1b6   : > { %897 = vst.msk [vmem:[%s1985_s16 + $0x48] sm:$0xff] %vm887_vm1, %v774_v39  ;;  %v769_v41 = vadd.f32 %v768_v40, %v1982_v22 }
 0x1b7   : > { %v1509_v42 = vpop.f32.mrf.mxu1 }
 0x1b8   : > { %896 = vst.msk [vmem:[%s1985_s16 + $0x40] sm:$0xff] %vm887_vm1, %v769_v41  ;;  %v784_v43 = vadd.f32 %v1509_v42, %v1982_v22 }
 0x1b9   : > { %v778_v44 = vpop.f32.mrf.mxu1 }
 0x1ba   : > { %899 = vst.msk [vmem:[%s1985_s16 + $0x58] sm:$0xff] %vm887_vm1, %v784_v43  ;;  %v779_v45 = vadd.f32 %v778_v44, %v1982_v22 }
 0x1bb   : > { %v1512_v46 = vpop.f32.mrf.mxu1 }
 0x1bc   : > { %898 = vst.msk [vmem:[%s1985_s16 + $0x50] sm:$0xff] %vm887_vm1, %v779_v45  ;;  %v794_v47 = vadd.f32 %v1512_v46, %v1982_v22 }
 0x1bd   : > { %v788_v48 = vpop.f32.mrf.mxu1 }
 0x1be   : > { %901 = vst.msk [vmem:[%s1985_s16 + $0x68] sm:$0xff] %vm887_vm1, %v794_v47  ;;  %v789_v49 = vadd.f32 %v788_v48, %v1982_v22 }
 0x1bf   : > { %v1515_v50 = vpop.f32.mrf.mxu1 }
 0x1c0   : > { %900 = vst.msk [vmem:[%s1985_s16 + $0x60] sm:$0xff] %vm887_vm1, %v789_v49  ;;  %v804_v51 = vadd.f32 %v1515_v50, %v1982_v22 }
 0x1c1   : > { %v798_v53 = vpop.f32.mrf.mxu1 }
 0x1c2   : > { %903 = vst.msk [vmem:[%s1985_s16 + $0x78] sm:$0xff] %vm887_vm1, %v804_v51  ;;  %v799_v54 = vadd.f32 %v798_v53, %v1982_v22 }
 0x1c3   : > { %v1518_v55 = vpop.f32.mrf.mxu1 }
 0x1c4   : > { %902 = vst.msk [vmem:[%s1985_s16 + $0x70] sm:$0xff] %vm887_vm1, %v799_v54  ;;  %v814_v56 = vadd.f32 %v1518_v55, %v1982_v22 }
 0x1c5   : > { %v808_v57 = vpop.f32.mrf.mxu1 }
 0x1c6   : > { %905 = vst.msk [vmem:[%s1985_s16 + $0x88] sm:$0xff] %vm887_vm1, %v814_v56  ;;  %v809_v58 = vadd.f32 %v808_v57, %v1982_v22 }
 0x1c7   : > { %v1521_v59 = vpop.f32.mrf.mxu1 }
 0x1c8   : > { %904 = vst.msk [vmem:[%s1985_s16 + $0x80] sm:$0xff] %vm887_vm1, %v809_v58  ;;  %v824_v60 = vadd.f32 %v1521_v59, %v1982_v22 }
 0x1c9   : > { %v818_v61 = vpop.f32.mrf.mxu1 }
 0x1ca   : > { %907 = vst.msk [vmem:[%s1985_s16 + $0x98] sm:$0xff] %vm887_vm1, %v824_v60  ;;  %v819_v62 = vadd.f32 %v818_v61, %v1982_v22 }
 0x1cb   : > { %v1524_v63 = vpop.f32.mrf.mxu1 }
 0x1cc   : > { %906 = vst.msk [vmem:[%s1985_s16 + $0x90] sm:$0xff] %vm887_vm1, %v819_v62  ;;  %v834_v0 = vadd.f32 %v1524_v63, %v1982_v22 }
 0x1cd   : > { %v828_v1 = vpop.f32.mrf.mxu1 }
 0x1ce   : > { %909 = vst.msk [vmem:[%s1985_s16 + $0xa8] sm:$0xff] %vm887_vm1, %v834_v0  ;;  %v829_v2 = vadd.f32 %v828_v1, %v1982_v22 }
 0x1cf   : > { %v1527_v3 = vpop.f32.mrf.mxu1 }
 0x1d0   : > { %908 = vst.msk [vmem:[%s1985_s16 + $0xa0] sm:$0xff] %vm887_vm1, %v829_v2  ;;  %v844_v4 = vadd.f32 %v1527_v3, %v1982_v22 }
 0x1d1   : > { %v838_v5 = vpop.f32.mrf.mxu1 }
 0x1d2   : > { %911 = vst.msk [vmem:[%s1985_s16 + $0xb8] sm:$0xff] %vm887_vm1, %v844_v4  ;;  %v839_v6 = vadd.f32 %v838_v5, %v1982_v22 }
 0x1d3   : > { %v1530_v7 = vpop.f32.mrf.mxu1 }
 0x1d4   : > { %910 = vst.msk [vmem:[%s1985_s16 + $0xb0] sm:$0xff] %vm887_vm1, %v839_v6  ;;  %v854_v8 = vadd.f32 %v1530_v7, %v1982_v22 }
 0x1d5   : > { %v848_v9 = vpop.f32.mrf.mxu1 }
 0x1d6   : > { %913 = vst.msk [vmem:[%s1985_s16 + $0xc8] sm:$0xff] %vm887_vm1, %v854_v8  ;;  %v849_v10 = vadd.f32 %v848_v9, %v1982_v22 }
 0x1d7   : > { %v1533_v11 = vpop.f32.mrf.mxu1 }
 0x1d8   : > { %912 = vst.msk [vmem:[%s1985_s16 + $0xc0] sm:$0xff] %vm887_vm1, %v849_v10  ;;  %v864_v12 = vadd.f32 %v1533_v11, %v1982_v22 }
 0x1d9   : > { %v858_v13 = vpop.f32.mrf.mxu1 }
 0x1da   : > { %915 = vst.msk [vmem:[%s1985_s16 + $0xd8] sm:$0xff] %vm887_vm1, %v864_v12  ;;  %v859_v14 = vadd.f32 %v858_v13, %v1982_v22 }
 0x1db   : > { %v1536_v15 = vpop.f32.mrf.mxu1 }
 0x1dc   : > { %914 = vst.msk [vmem:[%s1985_s16 + $0xd0] sm:$0xff] %vm887_vm1, %v859_v14  ;;  %v874_v16 = vadd.f32 %v1536_v15, %v1982_v22 }
 0x1dd   : > { %v868_v17 = vpop.f32.mrf.mxu1 }
 0x1de   : > { %917 = vst.msk [vmem:[%s1985_s16 + $0xe8] sm:$0xff] %vm887_vm1, %v874_v16  ;;  %v869_v18 = vadd.f32 %v868_v17, %v1982_v22 }
 0x1df   : > { %v1539_v19 = vpop.f32.mrf.mxu1 }
 0x1e0   : > { %916 = vst.msk [vmem:[%s1985_s16 + $0xe0] sm:$0xff] %vm887_vm1, %v869_v18  ;;  %v884_v20 = vadd.f32 %v1539_v19, %v1982_v22  ;;  %926 = sbr.rel (!%p1806_p4) target bundleno = 533 (0x215), region = 44 }
 0x1e1   : > { %v878_v21 = vpop.f32.mrf.mxu1 }
 0x1e2   : > { %919 = vst.msk [vmem:[%s1985_s16 + $0xf8] sm:$0xff] %vm887_vm1, %v884_v20  ;;  %v879_v23 = vadd.f32 %v878_v21, %v1982_v22 }
 0x1e4   : > { %918 = vst.msk [vmem:[%s1985_s16 + $0xf0] sm:$0xff] %vm887_vm1, %v879_v23 }
 0x1e5   : > { %s2237_s20 = smov (!%p929_p8, %s928_s20), 32 }
 0x1e6   : > { %s1302_s24 = sshll.u32 %s2237_s20, 7 }
 0x1e7   : > { %p1305_p9 = scmp.eq.s32.totalorder %s1302_s24, 0 }
 0x1e8   : > { %s2095_s28 = sshrl.u32 (!%p1305_p9), %s2237_s20, 5 }
 0x1e9   : > { %937 = sbr.rel (%p1305_p9) target bundleno = 533 (0x215), region = 48  ;;  %p1306_p10 = scmp.le.s32.totalorder (!%p1305_p9), %s2095_s28, 0 }
 0x1ee   : > { %1216 = sbr.rel (%p1306_p10) target bundleno = 516 (0x204), region = 124  ;;  %s2228_s4 = smov (!%p1306_p10), %s2089_s22 }
 0x1ef   : > { %s2229_s27 = smov (!%p1306_p10), %s1985_s16  ;;  %s2104_s7 = smov (!%p1306_p10), 0  }
 0x1f0   : > { %s2106_s29 = smov (!%p1306_p10), 0  }
 0x1f3 LB: >> { %v1062_v22 = vld [vmem:[%s1722_s27] sm:$0xff]  ;;  %v1064_v24 = vld [vmem:[%s1722_s27 + $0x8] sm:$0xff]  ;;  %v1066_v25 = vld [vmem:[%s1722_s27 + $0x10] sm:$0xff]  ;;  %s1126_s30 = sadd.s32 1, %s1726_s7  ;;  %s1056_s29 = sadd.s32 1, %s1730_s29   ;;  %s1730_s29 = sphi %s2106_s29, %s1056_s29   ;;  %s1726_s7 = sphi %s2104_s7, %s2232_s7   ;;  %s1722_s27 = sphi %s2229_s27, %s2231_s27   ;;  %s1718_s4 = sphi %s2228_s4, %s2230_s4  }
 0x1f4   : >> { %1063 = vst [vmem:[%s1718_s4] sm:$0xff] %v1062_v22  ;;  %1065 = vst [vmem:[%s1718_s4 + $0x8] sm:$0xff] %v1064_v24  ;;  %v1068_v52 = vld [vmem:[%s1722_s27 + $0x18] sm:$0xff]  ;;  %v1070_v26 = vld [vmem:[%s1722_s27 + $0x20] sm:$0xff]  ;;  %p1127_p11 = scmp.ge.s32.totalorder %s1126_s30, %s2095_s28  ;;  %p1055_p12 = scmp.ge.s32.totalorder %s1056_s29, %s2095_s28 }
 0x1f5   : >> { %1067 = vst [vmem:[%s1718_s4 + $0x10] sm:$0xff] %v1066_v25  ;;  %v1072_v27 = vld [vmem:[%s1722_s27 + $0x28] sm:$0xff]  ;;  %1069 = vst [vmem:[%s1718_s4 + $0x18] sm:$0xff] %v1068_v52  ;;  %v1074_v28 = vld [vmem:[%s1722_s27 + $0x30] sm:$0xff] }
 0x1f6   : >> { %1071 = vst [vmem:[%s1718_s4 + $0x20] sm:$0xff] %v1070_v26  ;;  %1073 = vst [vmem:[%s1718_s4 + $0x28] sm:$0xff] %v1072_v27  ;;  %v1076_v29 = vld [vmem:[%s1722_s27 + $0x38] sm:$0xff]  ;;  %v1078_v30 = vld [vmem:[%s1722_s27 + $0x40] sm:$0xff]  ;;  %s2239_s30 = smov (%p1127_p11, %s1126_s30), 0 }
 0x1f7   : >> { %1075 = vst [vmem:[%s1718_s4 + $0x30] sm:$0xff] %v1074_v28  ;;  %1077 = vst [vmem:[%s1718_s4 + $0x38] sm:$0xff] %v1076_v29  ;;  %v1080_v31 = vld [vmem:[%s1722_s27 + $0x48] sm:$0xff]  ;;  %v1082_v32 = vld [vmem:[%s1722_s27 + $0x50] sm:$0xff]  ;;  %s1307_s6 = sshll.u32 %s2239_s30, 8  ;;  %s2232_s7 = smov %s2239_s30 }
 0x1f8   : >> { %1079 = vst [vmem:[%s1718_s4 + $0x40] sm:$0xff] %v1078_v30  ;;  %v1084_v33 = vld [vmem:[%s1722_s27 + $0x58] sm:$0xff]  ;;  %1081 = vst [vmem:[%s1718_s4 + $0x48] sm:$0xff] %v1080_v31  ;;  %v1086_v34 = vld [vmem:[%s1722_s27 + $0x60] sm:$0xff]  ;;  %s2162_s8 = scalar_lea.vmem %s1985_s16, %s1307_s6 [#allocation3]   ;;  %s1132_s9 = scalar_lea.vmem %s2089_s22, %s1307_s6  }
 0x1f9   : >> { %1083 = vst [vmem:[%s1718_s4 + $0x50] sm:$0xff] %v1082_v32  ;;  %1085 = vst [vmem:[%s1718_s4 + $0x58] sm:$0xff] %v1084_v33  ;;  %v1088_v35 = vld [vmem:[%s1722_s27 + $0x68] sm:$0xff]  ;;  %v1090_v36 = vld [vmem:[%s1722_s27 + $0x70] sm:$0xff] }
 0x1fa   : >> { %1087 = vst [vmem:[%s1718_s4 + $0x60] sm:$0xff] %v1086_v34  ;;  %1089 = vst [vmem:[%s1718_s4 + $0x68] sm:$0xff] %v1088_v35  ;;  %v1092_v37 = vld [vmem:[%s1722_s27 + $0x78] sm:$0xff]  ;;  %v1094_v38 = vld [vmem:[%s1722_s27 + $0x80] sm:$0xff] }
 0x1fb   : >> { %1091 = vst [vmem:[%s1718_s4 + $0x70] sm:$0xff] %v1090_v36  ;;  %v1096_v39 = vld [vmem:[%s1722_s27 + $0x88] sm:$0xff]  ;;  %1093 = vst [vmem:[%s1718_s4 + $0x78] sm:$0xff] %v1092_v37  ;;  %v1098_v40 = vld [vmem:[%s1722_s27 + $0x90] sm:$0xff] }
 0x1fc   : >> { %1095 = vst [vmem:[%s1718_s4 + $0x80] sm:$0xff] %v1094_v38  ;;  %1097 = vst [vmem:[%s1718_s4 + $0x88] sm:$0xff] %v1096_v39  ;;  %v1100_v41 = vld [vmem:[%s1722_s27 + $0x98] sm:$0xff]  ;;  %v1102_v42 = vld [vmem:[%s1722_s27 + $0xa0] sm:$0xff] }
 0x1fd   : >> { %1099 = vst [vmem:[%s1718_s4 + $0x90] sm:$0xff] %v1098_v40  ;;  %1101 = vst [vmem:[%s1718_s4 + $0x98] sm:$0xff] %v1100_v41  ;;  %v1104_v43 = vld [vmem:[%s1722_s27 + $0xa8] sm:$0xff]  ;;  %v1106_v44 = vld [vmem:[%s1722_s27 + $0xb0] sm:$0xff] }
 0x1fe   : >> { %1103 = vst [vmem:[%s1718_s4 + $0xa0] sm:$0xff] %v1102_v42  ;;  %v1108_v45 = vld [vmem:[%s1722_s27 + $0xb8] sm:$0xff]  ;;  %1105 = vst [vmem:[%s1718_s4 + $0xa8] sm:$0xff] %v1104_v43  ;;  %v1110_v46 = vld [vmem:[%s1722_s27 + $0xc0] sm:$0xff] }
 0x1ff   : >> { %1107 = vst [vmem:[%s1718_s4 + $0xb0] sm:$0xff] %v1106_v44  ;;  %1109 = vst [vmem:[%s1718_s4 + $0xb8] sm:$0xff] %v1108_v45  ;;  %v1112_v47 = vld [vmem:[%s1722_s27 + $0xc8] sm:$0xff]  ;;  %v1114_v48 = vld [vmem:[%s1722_s27 + $0xd0] sm:$0xff]  ;;  %1058 = sbr.rel (!%p1055_p12) target bundleno = 499 (0x1f3), region = 130 }
 0x200   : >> { %1111 = vst [vmem:[%s1718_s4 + $0xc0] sm:$0xff] %v1110_v46  ;;  %1113 = vst [vmem:[%s1718_s4 + $0xc8] sm:$0xff] %v1112_v47  ;;  %v1116_v49 = vld [vmem:[%s1722_s27 + $0xd8] sm:$0xff]  ;;  %v1118_v50 = vld [vmem:[%s1722_s27 + $0xe0] sm:$0xff] }
 0x201   : >> { %1115 = vst [vmem:[%s1718_s4 + $0xd0] sm:$0xff] %v1114_v48  ;;  %v1120_v51 = vld [vmem:[%s1722_s27 + $0xe8] sm:$0xff]  ;;  %1117 = vst [vmem:[%s1718_s4 + $0xd8] sm:$0xff] %v1116_v49  ;;  %v1122_v53 = vld [vmem:[%s1722_s27 + $0xf0] sm:$0xff] }
 0x202   : >> { %1119 = vst [vmem:[%s1718_s4 + $0xe0] sm:$0xff] %v1118_v50  ;;  %1121 = vst [vmem:[%s1718_s4 + $0xe8] sm:$0xff] %v1120_v51  ;;  %v1124_v54 = vld [vmem:[%s1722_s27 + $0xf8] sm:$0xff]  ;;  %s2231_s27 = smov %s2162_s8 }
 0x203   : >> { %1123 = vst [vmem:[%s1718_s4 + $0xf0] sm:$0xff] %v1122_v53  ;;  %1125 = vst [vmem:[%s1718_s4 + $0xf8] sm:$0xff] %v1124_v54  ;;  %s2230_s4 = smov %s1132_s9 }
 0x204 PF: > { %s2203_s25 = sand.u32 31, %s2237_s20   ;;  %s1318_s10 = sshll.u32 %s2095_s28, 8 }
 0x205   : > { %s1137_s11 = scalar_lea.vmem %s1985_s16, %s1318_s10 [#allocation3]   ;;  %s1139_s12 = scalar_lea.vmem %s2089_s22, %s1318_s10  }
 0x206   : > { %p1312_p13 = scmp.le.s32.totalorder %s2203_s25, 0 }
 0x207   : > { %s1732_s13 = smov (!%p1312_p13), %s1139_s12   ;;  %s1736_s14 = smov (!%p1312_p13), %s1137_s11  }
 0x208   : > { %1230 = sbr.rel (%p1312_p13) target bundleno = 533 (0x215), region = 135  ;;  %s1740_s15 = smov (!%p1312_p13), 0  }
 0x209   : > { %s1744_s17 = smov (!%p1312_p13), 0  }
 0x20d LB: >> { %v1149_v55 = vld [vmem:[%s1738_s14] sm:$0xff]  ;;  %s1151_s20 = sadd.s32 1, %s1742_s15  ;;  %s1143_s17 = sadd.s32 1, %s1746_s17   ;;  %s1746_s17 = sphi %s1744_s17, %s1143_s17   ;;  %s1742_s15 = sphi %s1740_s15, %s1741_s15   ;;  %s1738_s14 = sphi %s1736_s14, %s1156_s14   ;;  %s1734_s13 = sphi %s1732_s13, %s1157_s13  }
 0x20e   : >> { %1150 = vst [vmem:[%s1734_s13] sm:$0xff] %v1149_v55  ;;  %p1152_p0 = scmp.ge.s32.totalorder %s1151_s20, %s2203_s25  ;;  %p1142_p1 = scmp.ge.s32.totalorder %s1143_s17, %s2203_s25 }
 0x210   : >> { %s2241_s20 = smov (%p1152_p0, %s1151_s20), 0  ;;  %1145 = sbr.rel (!%p1142_p1) target bundleno = 525 (0x20d), region = 141 }
 0x211   : >> { %s1313_s16 = sshll.u32 %s2241_s20, 3  ;;  %s1741_s15 = smov %s2241_s20  }
 0x212   : >> { %s1156_s14 = scalar_lea.vmem %s1137_s11, %s1313_s16 [#allocation3]   ;;  %s1157_s13 = scalar_lea.vmem %s1139_s12, %s1313_s16  }
 0x215 PF: > { %p13_p2 = scmp.ge.s32.totalorder %s1796_s23, 6   ;;  %s2233_s20 = smov %s1710_s21 }
 0x216   : > { %s2234_s21 = smov %s1804_s26  ;;  %s2235_s22 = smov %s1796_s23 }
 0x217   :  { %15 = sbr.rel (!%p13_p2) target bundleno = 4 (0x4), region = 152 }

</bundles_post_ra>
